<compile_context>
chip_gen: v7x
topology: tpu7x:2x2x1
jax: 0.10.0
libtpu: 0.0.40
codegen_flags: <defaults>
</compile_context>

<pallas_src>
import functools

import jax
import jax.numpy as jnp
import numpy as np
from jax.experimental import pallas as pl
from jax.experimental.pallas import tpu as pltpu

IGNORE_INDEX = -100
ALPHA = 0.15


def _stage_tile_kernel(p_ref, t_ref, out_ref, carry_ref, *, total_T,
                       tiles_per_half):
    """One grid step = one (half, stage, frame-tile) triple.

    p_ref    : (1, B, C, Tt) logits tile (bf16 or f32; upcast to f32 here)
    t_ref    : (B, Tt) int32 labels tile
    out_ref  : (1, 1, 8, 128) f32, resident across the frame-tile axis for this
               (stage, half).  lane 0 accumulates the CE numerator, lane 1 the
               valid-frame count, lane 2 the consistency-MSE numerator.
    carry_ref: (B, C, 1) f32 VMEM scratch -- previous tile's last-frame
               log-probs (cross-tile consistency difference within a half).
    """
    h = pl.program_id(0)
    t_loc = pl.program_id(2)
    g_tile = h * tiles_per_half + t_loc          # global frame-tile index

    p = p_ref[0].astype(jnp.float32)             # (B, C, Tt) f32
    tgt = t_ref[...]                             # (B, Tt) int32
    B, C, Tt = p.shape

    first_frame = g_tile * Tt                    # scalar, global frame of lane 0

    # ---- log_softmax over the class axis (axis=1), all in f32 ----
    m = jnp.max(p, axis=1, keepdims=True)
    z = p - m
    lse = jnp.log(jnp.sum(jnp.exp(z), axis=1, keepdims=True))
    logp = z - lse                               # (B, C, Tt)

    # ---- frame-range mask (partial last tile / padding tiles) ----
    frame2d = first_frame + jax.lax.broadcasted_iota(jnp.int32, (B, Tt), 1)
    valid = (tgt != IGNORE_INDEX) & (frame2d < total_T)        # (B, Tt)

    # ---- cross-entropy numerator & valid count ----
    # Invalid frames get class -1, which never matches the class iota, so no
    # extra per-element mask is needed on the (B,C,Tt) select.
    t_sel = jnp.where(valid, tgt, -1)                          # (B, Tt)
    cls = jax.lax.broadcasted_iota(jnp.int32, (1, C, 1), 1)    # (1, C, 1)
    sel = cls == t_sel[:, None, :]                             # (B, C, Tt)
    ce_t = -jnp.sum(jnp.where(sel, logp, 0.0))
    cnt_t = jnp.sum(valid.astype(jnp.float32))

    # ---- consistency numerator: min((logp[g+1]-logp[g])^2, 16) ----
    # Neighbour frame via a circular lane rotation (XLU): logp_nb[l] =
    # logp[(l+1) % Tt].  Mask the wrap lane (l == Tt-1, also correct for Tt==2)
    # and any pair whose neighbour frame is out of range.
    logp_nb = pltpu.roll(logp, shift=Tt - 1, axis=2)
    lane = jax.lax.broadcasted_iota(jnp.int32, (1, 1, Tt), 2)
    pair_ok = (lane < Tt - 1) & (first_frame + lane + 1 < total_T)
    d = logp_nb - logp
    cons_t = jnp.sum(jnp.where(pair_ok, jnp.minimum(d * d, 16.0), 0.0))

    # Cross-tile boundary pair: previous tile's last frame vs this tile's first
    # frame.  Gated on t_loc > 0 (uninitialised carry never propagates) and on
    # this tile holding a real frame (excludes padding tiles of an odd split).
    db = logp[:, :, 0:1] - carry_ref[...]                      # (B, C, 1)
    cons_b = jnp.sum(jnp.minimum(db * db, 16.0))
    boundary_ok = (t_loc > 0) & (first_frame < total_T)
    cons_t = cons_t + jnp.where(boundary_ok, cons_b, 0.0)

    # Carry this tile's last-frame log-probs to the next frame tile.
    carry_ref[...] = logp[:, :, Tt - 1:Tt]

    # ---- accumulate the three scalars into lanes 0/1/2 of the output ----
    @pl.when(t_loc == 0)
    def _():
        out_ref[...] = jnp.zeros(out_ref.shape, out_ref.dtype)

    lidx = jax.lax.broadcasted_iota(jnp.int32, out_ref.shape, 3)
    packed = jnp.where(lidx == 0, ce_t,
             jnp.where(lidx == 1, cnt_t,
             jnp.where(lidx == 2, cons_t, 0.0)))
    out_ref[...] += packed


def _vmem_limit_bytes():
    """Generation-aware VMEM limit: ~64 MiB on 128 MiB parts, ~45 MiB on v7x."""
    try:
        cap = int(pltpu.get_tpu_info().vmem_capacity_bytes)
        if cap <= 0:
            cap = 64 * 1024 * 1024
    except Exception:
        cap = 64 * 1024 * 1024          # conservative (v7x-sized) fallback
    return max(16 * 1024 * 1024, min(int(cap * 0.7), 64 * 1024 * 1024))


def _pick_t_tile(B, C, T, itemsize, vmem_limit, t_tile=None):
    """Choose a frame-tile size: multiple of 128 (or == T), bounded VMEM."""
    if t_tile is None:
        budget = vmem_limit // 2                     # headroom for compiler temps
        # 2x double-buffered input block + ~10 live f32 (B,C,Tt) temporaries.
        bytes_per_frame = B * C * (2 * itemsize + 40)
        tt = budget // max(1, bytes_per_frame)
        tt = max(128, min(32768, (tt // 128) * 128))
    else:
        tt = int(t_tile)
    if T <= tt:
        return T                          # single tile == full frame axis
    return max(128, (tt // 128) * 128)    # tiled path: lane-dim multiple of 128


@functools.partial(jax.jit, static_argnames=("alpha", "t_tile"))
def ms_tcn_loss(predictions, target, alpha=ALPHA, t_tile=None):
    """predictions: (S, B, C, T) float (f32 or bf16); target: (B, T) int."""
    target = target.astype(jnp.int32)
    S, B, C, T = predictions.shape

    vmem_limit = _vmem_limit_bytes()
    tt = _pick_t_tile(B, C, T, predictions.dtype.itemsize, vmem_limit, t_tile)
    num_t = -(-T // tt)
    # Split the frame tiles into two halves so megacore (v7x) is balanced for
    # any S; on single-TC chips this is just a harmless sequential split.
    H = 2 if num_t >= 2 else 1
    tph = -(-num_t // H)                  # frame tiles per half

    kernel = functools.partial(_stage_tile_kernel, total_T=T,
                               tiles_per_half=tph)

    # Padding tiles (when num_t is odd) are clamped to the last real tile for
    # the DMA; the kernel masks them out via the global frame index.
    def pred_map(h, s, t):
        return (s, 0, 0, jnp.minimum(h * tph + t, num_t - 1))

    def tgt_map(h, s, t):
        return (0, jnp.minimum(h * tph + t, num_t - 1))

    pred_bytes = predictions.size * predictions.dtype.itemsize
    cost = pl.CostEstimate(
        flops=int(15 * S * B * C * T),
        transcendentals=int(S * B * C * T + S * B * T),
        bytes_accessed=int(pred_bytes + S * target.size * 4
                           + S * H * 8 * 128 * 4),
    )

    stats = pl.pallas_call(
        kernel,
        out_shape=jax.ShapeDtypeStruct((S, H, 8, 128), jnp.float32),
        grid=(H, S, tph),
        in_specs=[
            pl.BlockSpec((1, B, C, tt), pred_map),
            pl.BlockSpec((B, tt), tgt_map),
        ],
        out_specs=pl.BlockSpec((1, 1, 8, 128), lambda h, s, t: (s, h, 0, 0)),
        scratch_shapes=[pltpu.VMEM((B, C, 1), jnp.float32)],
        compiler_params=pltpu.CompilerParams(
            dimension_semantics=("parallel", "parallel", "arbitrary"),
            vmem_limit_bytes=vmem_limit,
        ),
        cost_estimate=cost,
    )(predictions, target)

    ce_sum = jnp.sum(stats[:, :, 0, 0], axis=1)      # (S,)
    count = jnp.sum(stats[:, :, 0, 1], axis=1)       # (S,)
    cons_sum = jnp.sum(stats[:, :, 0, 2], axis=1)    # (S,)

    if H == 2:
        # The single cross-half consistency pair per stage is invisible to the
        # kernel (the VMEM carry cannot cross the parallel half axis): add it
        # here with a tiny JAX log_softmax on two frames per stage.
        bidx = tph * tt                               # first frame of half 1 (< T)
        pb = predictions[:, :, :, bidx - 1:bidx + 1].astype(jnp.float32)
        lpb = jax.nn.log_softmax(pb, axis=2)
        dpb = lpb[..., 1] - lpb[..., 0]
        cons_sum = cons_sum + jnp.sum(jnp.minimum(dpb * dpb, 16.0), axis=(1, 2))

    # CrossEntropyLoss(mean over valid frames); 0 if no valid frames (matches
    # the module's explicit `if sum(mask)==0: return 0` guard).
    ce = jnp.where(count > 0, ce_sum / jnp.maximum(count, 1.0), 0.0)
    # MSELoss(reduction='none') -> clamp -> mean over all B*C*(T-1) elements.
    if T > 1:
        cons = cons_sum / float(B * C * (T - 1))
    else:
        # TODO(synk): PyTorch would return NaN for T==1 (mean of empty tensor);
        # we deliberately return 0 for the consistency term instead.
        cons = jnp.zeros_like(cons_sum)
    per_stage = ce + alpha * cons
    # forward: sum over stages, then divide by len(predictions) == S.
    return jnp.sum(per_stage) / float(S)


def _reference_loss(predictions, target, alpha=ALPHA):
    """Pure-JAX reference replicating the PyTorch module (default config)."""
    predictions = predictions.astype(jnp.float32)
    S, B, C, T = predictions.shape
    total = 0.0
    for s in range(S):
        p = predictions[s]
        logp = jax.nn.log_softmax(p, axis=1)
        valid = target != IGNORE_INDEX
        t_safe = jnp.where(valid, target, 0)
        picked = jnp.take_along_axis(logp, t_safe[:, None, :], axis=1)[:, 0, :]
        cnt = jnp.sum(valid)
        ce = jnp.where(
            cnt > 0,
            jnp.sum(jnp.where(valid, -picked, 0.0)) / jnp.maximum(cnt, 1),
            0.0,
        )
        d = logp[:, :, 1:] - logp[:, :, :-1]
        cons = jnp.mean(jnp.clip(d * d, 0.0, 16.0))
        total = total + ce + alpha * cons
    return total / S


if __name__ == "__main__":
    S, B, C = 3, 2, 4   # stages, batch, classes

    def make_inputs(T, dtype, seed=0):
        kp, kt, km = jax.random.split(jax.random.PRNGKey(seed), 3)
        preds = jax.random.normal(kp, (S, B, C, T), dtype=jnp.float32).astype(dtype)
        tgt = jax.random.randint(kt, (B, T), 0, C, dtype=jnp.int32)
        ignore_mask = jax.random.bernoulli(km, 0.15, (B, T))
        tgt = jnp.where(ignore_mask, IGNORE_INDEX, tgt)
        return preds, tgt

    def check(T, dtype, t_tile):
        preds, tgt = make_inputs(T, dtype)
        loss = ms_tcn_loss(preds, tgt, t_tile=t_tile)
        jax.block_until_ready(loss)
        ref = _reference_loss(preds, tgt)
        np.testing.assert_allclose(np.asarray(loss), np.asarray(ref),
                                   rtol=1e-4, atol=1e-5)

    # 1) f32, T a multiple of the tile (two halves, cross-half boundary pair
    #    handled in the JAX epilogue).
    check(256, jnp.float32, 128)

    # 2) f32, ragged T (partial last tile masking).
    check(200, jnp.float32, 128)

    # 3) f32, odd tile count (half 1 carries a clamped padding tile + in-half
    #    boundary carry + cross-half epilogue pair).
    check(384, jnp.float32, 128)

    # 4) bf16 logits (halved HBM traffic); in-kernel math stays f32, so the
    #    result must match the f32 reference evaluated on the same values.
    check(256, jnp.bfloat16, 128)

    # 5) default (auto) tile size: single large tile, H == 1 path.
    check(512, jnp.float32, None)

    print("KERNEL_OK")
</pallas_src>

<mosaic_0001>
module attributes {stable_mosaic.version = 11 : i64} {
  func.func @_stage_tile_kernel(%arg0: i32, %arg1: i32, %arg2: i32, %arg3: memref<1x2x4x128xf32, #tpu.memory_space<vmem>>, %arg4: memref<2x128xi32, #tpu.memory_space<vmem>>, %arg5: memref<1x1x8x128xf32, #tpu.memory_space<vmem>>, %arg6: memref<2x4x1xf32, #tpu.memory_space<vmem>>) attributes {dimension_semantics = [#tpu.dimension_semantics<parallel>, #tpu.dimension_semantics<parallel>, #tpu.dimension_semantics<arbitrary>], iteration_bounds = array<i64: 2, 3, 1>, scalar_prefetch = 0 : i64, scratch_operands = 1 : i64, tpu.core_type = #tpu.core_type<tc>, window_params = [{transform_indices = @transform_0, window_bounds = array<i64: 1, 2, 4, 128>}, {transform_indices = @transform_1, window_bounds = array<i64: 2, 128>}, {transform_indices = @transform_2, window_bounds = array<i64: 1, 1, 8, 128>}]} {
    %c1_i32 = arith.constant 1 : i32
    %0 = arith.muli %arg0, %c1_i32 : i32
    %1 = arith.addi %0, %arg2 : i32
    %c0 = arith.constant 0 : index
    %c0_0 = arith.constant 0 : index
    %c0_1 = arith.constant 0 : index
    %c0_2 = arith.constant 0 : index
    %2 = vector.load %arg3[%c0, %c0_0, %c0_1, %c0_2] : memref<1x2x4x128xf32, #tpu.memory_space<vmem>>, vector<1x2x4x128xf32>
    %3 = vector.shape_cast %2 : vector<1x2x4x128xf32> to vector<2x4x128xf32>
    %c0_3 = arith.constant 0 : index
    %c0_4 = arith.constant 0 : index
    %4 = vector.load %arg4[%c0_3, %c0_4] : memref<2x128xi32, #tpu.memory_space<vmem>>, vector<2x128xi32>
    %c128_i32 = arith.constant 128 : i32
    %5 = arith.muli %1, %c128_i32 : i32
    %cst = arith.constant dense<0xFF800000> : vector<2x128xf32>
    %6 = vector.multi_reduction <maximumf>, %3, %cst [1] : vector<2x4x128xf32> to vector<2x128xf32>
    %7 = vector.shape_cast %6 : vector<2x128xf32> to vector<2x1x128xf32>
    %8 = vector.broadcast %7 : vector<2x1x128xf32> to vector<2x4x128xf32>
    %9 = arith.subf %3, %8 : vector<2x4x128xf32>
    %10 = math.exp %9 : vector<2x4x128xf32>
    %cst_5 = arith.constant dense<0.000000e+00> : vector<2x128xf32>
    %11 = vector.multi_reduction <add>, %10, %cst_5 [1] : vector<2x4x128xf32> to vector<2x128xf32>
    %12 = vector.shape_cast %11 : vector<2x128xf32> to vector<2x1x128xf32>
    %13 = math.log %12 : vector<2x1x128xf32>
    %14 = vector.broadcast %13 : vector<2x1x128xf32> to vector<2x4x128xf32>
    %15 = arith.subf %9, %14 : vector<2x4x128xf32>
    %16 = tpu.iota {dimensions = array<i32: 1>} : vector<2x128xi32>
    %17 = vector.broadcast %5 : i32 to vector<2x128xi32>
    %18 = arith.addi %17, %16 : vector<2x128xi32>
    %c-100_i32 = arith.constant -100 : i32
    %19 = vector.broadcast %c-100_i32 : i32 to vector<2x128xi32>
    %20 = arith.cmpi ne, %4, %19 : vector<2x128xi32>
    %c256_i32 = arith.constant 256 : i32
    %21 = vector.broadcast %c256_i32 : i32 to vector<2x128xi32>
    %22 = arith.cmpi slt, %18, %21 : vector<2x128xi32>
    %23 = arith.andi %20, %22 : vector<2x128xi1>
    %c-1_i32 = arith.constant -1 : i32
    %24 = vector.broadcast %c-1_i32 : i32 to vector<2x128xi32>
    %25 = arith.select %23, %4, %24 : vector<2x128xi1>, vector<2x128xi32>
    %26 = tpu.iota {dimensions = array<i32: 1>} : vector<1x4x1xi32>
    %27 = vector.shape_cast %25 : vector<2x128xi32> to vector<2x1x128xi32>
    %28 = vector.broadcast %26 : vector<1x4x1xi32> to vector<2x4x128xi32>
    %29 = vector.broadcast %27 : vector<2x1x128xi32> to vector<2x4x128xi32>
    %30 = arith.cmpi eq, %28, %29 : vector<2x4x128xi32>
    %cst_6 = arith.constant 0.000000e+00 : f32
    %31 = vector.broadcast %cst_6 : f32 to vector<2x4x128xf32>
    %32 = arith.select %30, %15, %31 : vector<2x4x128xi1>, vector<2x4x128xf32>
    %33 = vector.shape_cast %32 : vector<2x4x128xf32> to vector<1x2x4x128xf32>
    %cst_7 = arith.constant dense<0.000000e+00> : vector<1xf32>
    %34 = vector.multi_reduction <add>, %33, %cst_7 [1, 2, 3] : vector<1x2x4x128xf32> to vector<1xf32>
    %35 = vector.shape_cast %34 : vector<1xf32> to vector<1x1x1x1xf32>
    %36 = vector.extract %35[0, 0, 0, 0] : f32 from vector<1x1x1x1xf32>
    %cst_8 = arith.constant 0.000000e+00 : f32
    %37 = arith.subf %cst_8, %36 : f32
    %38 = arith.extui %23 : vector<2x128xi1> to vector<2x128xi32>
    %39 = arith.sitofp %38 : vector<2x128xi32> to vector<2x128xf32>
    %40 = vector.shape_cast %39 : vector<2x128xf32> to vector<1x2x128xf32>
    %cst_9 = arith.constant dense<0.000000e+00> : vector<1xf32>
    %41 = vector.multi_reduction <add>, %40, %cst_9 [1, 2] : vector<1x2x128xf32> to vector<1xf32>
    %42 = vector.shape_cast %41 : vector<1xf32> to vector<1x1x1xf32>
    %43 = vector.extract %42[0, 0, 0] : f32 from vector<1x1x1xf32>
    %c127_i32 = arith.constant 127 : i32
    %44 = tpu.dynamic_rotate %15 by %c127_i32 dim 2 : vector<2x4x128xf32>, i32 -> vector<2x4x128xf32>
    %45 = tpu.iota {dimensions = array<i32: 2>} : vector<1x1x128xi32>
    %c127_i32_10 = arith.constant 127 : i32
    %46 = vector.broadcast %c127_i32_10 : i32 to vector<1x1x128xi32>
    %47 = arith.cmpi slt, %45, %46 : vector<1x1x128xi32>
    %48 = vector.broadcast %5 : i32 to vector<1x1x128xi32>
    %49 = arith.addi %48, %45 : vector<1x1x128xi32>
    %c1_i32_11 = arith.constant 1 : i32
    %50 = vector.broadcast %c1_i32_11 : i32 to vector<1x1x128xi32>
    %51 = arith.addi %49, %50 : vector<1x1x128xi32>
    %c256_i32_12 = arith.constant 256 : i32
    %52 = vector.broadcast %c256_i32_12 : i32 to vector<1x1x128xi32>
    %53 = arith.cmpi slt, %51, %52 : vector<1x1x128xi32>
    %54 = arith.andi %47, %53 : vector<1x1x128xi1>
    %55 = arith.subf %44, %15 : vector<2x4x128xf32>
    %56 = arith.mulf %55, %55 : vector<2x4x128xf32>
    %cst_13 = arith.constant 1.600000e+01 : f32
    %57 = vector.broadcast %cst_13 : f32 to vector<2x4x128xf32>
    %58 = arith.minimumf %56, %57 : vector<2x4x128xf32>
    %cst_14 = arith.constant 0.000000e+00 : f32
    %59 = vector.shape_cast %54 : vector<1x1x128xi1> to vector<1x1x128xi1>
    %60 = vector.broadcast %59 : vector<1x1x128xi1> to vector<2x4x128xi1>
    %61 = vector.broadcast %cst_14 : f32 to vector<2x4x128xf32>
    %62 = arith.select %60, %58, %61 : vector<2x4x128xi1>, vector<2x4x128xf32>
    %63 = vector.shape_cast %62 : vector<2x4x128xf32> to vector<1x2x4x128xf32>
    %cst_15 = arith.constant dense<0.000000e+00> : vector<1xf32>
    %64 = vector.multi_reduction <add>, %63, %cst_15 [1, 2, 3] : vector<1x2x4x128xf32> to vector<1xf32>
    %65 = vector.shape_cast %64 : vector<1xf32> to vector<1x1x1x1xf32>
    %66 = vector.extract %65[0, 0, 0, 0] : f32 from vector<1x1x1x1xf32>
    %67 = vector.extract_strided_slice %15 {offsets = [0, 0, 0], sizes = [2, 4, 1], strides = [1, 1, 1]} : vector<2x4x128xf32> to vector<2x4x1xf32>
    %c0_16 = arith.constant 0 : index
    %c0_17 = arith.constant 0 : index
    %c0_18 = arith.constant 0 : index
    %68 = vector.load %arg6[%c0_16, %c0_17, %c0_18] : memref<2x4x1xf32, #tpu.memory_space<vmem>>, vector<2x4x1xf32>
    %69 = arith.subf %67, %68 : vector<2x4x1xf32>
    %70 = arith.mulf %69, %69 : vector<2x4x1xf32>
    %cst_19 = arith.constant 1.600000e+01 : f32
    %71 = vector.broadcast %cst_19 : f32 to vector<2x4x1xf32>
    %72 = arith.minimumf %70, %71 : vector<2x4x1xf32>
    %73 = vector.shape_cast %72 : vector<2x4x1xf32> to vector<1x2x4x1xf32>
    %cst_20 = arith.constant dense<0.000000e+00> : vector<1xf32>
    %74 = vector.multi_reduction <add>, %73, %cst_20 [1, 2, 3] : vector<1x2x4x1xf32> to vector<1xf32>
    %75 = vector.shape_cast %74 : vector<1xf32> to vector<1x1x1x1xf32>
    %76 = vector.extract %75[0, 0, 0, 0] : f32 from vector<1x1x1x1xf32>
    %c0_i32 = arith.constant 0 : i32
    %77 = arith.cmpi sgt, %arg2, %c0_i32 : i32
    %c256_i32_21 = arith.constant 256 : i32
    %78 = arith.cmpi slt, %5, %c256_i32_21 : i32
    %79 = arith.andi %77, %78 : i1
    %cst_22 = arith.constant 0.000000e+00 : f32
    %80 = arith.select %79, %76, %cst_22 : f32
    %81 = arith.addf %66, %80 : f32
    %82 = vector.extract_strided_slice %15 {offsets = [0, 0, 127], sizes = [2, 4, 1], strides = [1, 1, 1]} : vector<2x4x128xf32> to vector<2x4x1xf32>
    %c0_23 = arith.constant 0 : index
    %c0_24 = arith.constant 0 : index
    %c0_25 = arith.constant 0 : index
    %83 = vector.load %arg6[%c0_23, %c0_24, %c0_25] : memref<2x4x1xf32, #tpu.memory_space<vmem>>, vector<2x4x1xf32>
    tpu.vector_store %arg6[%c0_23, %c0_24, %c0_25], %82 {strides = array<i32>} : memref<2x4x1xf32, #tpu.memory_space<vmem>>, vector<2x4x1xf32>,
    %c0_i32_26 = arith.constant 0 : i32
    %84 = arith.cmpi eq, %arg2, %c0_i32_26 : i32
    %85 = arith.extui %84 : i1 to i32
    %c0_i32_27 = arith.constant 0 : i32
    %86 = arith.cmpi ne, %85, %c0_i32_27 : i32
    scf.if %86 {
      %cst_39 = arith.constant 0.000000e+00 : f32
      %104 = vector.broadcast %cst_39 : f32 to vector<1x1x8x128xf32>
      %c0_40 = arith.constant 0 : index
      %c0_41 = arith.constant 0 : index
      %c0_42 = arith.constant 0 : index
      %c0_43 = arith.constant 0 : index
      %105 = vector.load %arg5[%c0_40, %c0_41, %c0_42, %c0_43] : memref<1x1x8x128xf32, #tpu.memory_space<vmem>>, vector<1x1x8x128xf32>
      tpu.vector_store %arg5[%c0_40, %c0_41, %c0_42, %c0_43], %104 {strides = array<i32>} : memref<1x1x8x128xf32, #tpu.memory_space<vmem>>, vector<1x1x8x128xf32>,
    } else {
    }
    %87 = tpu.iota {dimensions = array<i32: 3>} : vector<1x1x8x128xi32>
    %c0_i32_28 = arith.constant 0 : i32
    %88 = vector.broadcast %c0_i32_28 : i32 to vector<1x1x8x128xi32>
    %89 = arith.cmpi eq, %87, %88 : vector<1x1x8x128xi32>
    %c1_i32_29 = arith.constant 1 : i32
    %90 = vector.broadcast %c1_i32_29 : i32 to vector<1x1x8x128xi32>
    %91 = arith.cmpi eq, %87, %90 : vector<1x1x8x128xi32>
    %c2_i32 = arith.constant 2 : i32
    %92 = vector.broadcast %c2_i32 : i32 to vector<1x1x8x128xi32>
    %93 = arith.cmpi eq, %87, %92 : vector<1x1x8x128xi32>
    %cst_30 = arith.constant 0.000000e+00 : f32
    %94 = vector.broadcast %81 : f32 to vector<1x1x8x128xf32>
    %95 = vector.broadcast %cst_30 : f32 to vector<1x1x8x128xf32>
    %96 = arith.select %93, %94, %95 : vector<1x1x8x128xi1>, vector<1x1x8x128xf32>
    %97 = vector.broadcast %43 : f32 to vector<1x1x8x128xf32>
    %98 = arith.select %91, %97, %96 : vector<1x1x8x128xi1>, vector<1x1x8x128xf32>
    %99 = vector.broadcast %37 : f32 to vector<1x1x8x128xf32>
    %100 = arith.select %89, %99, %98 : vector<1x1x8x128xi1>, vector<1x1x8x128xf32>
    %c0_31 = arith.constant 0 : index
    %c0_32 = arith.constant 0 : index
    %c0_33 = arith.constant 0 : index
    %c0_34 = arith.constant 0 : index
    %101 = vector.load %arg5[%c0_31, %c0_32, %c0_33, %c0_34] : memref<1x1x8x128xf32, #tpu.memory_space<vmem>>, vector<1x1x8x128xf32>
    %102 = arith.addf %101, %100 : vector<1x1x8x128xf32>
    %c0_35 = arith.constant 0 : index
    %c0_36 = arith.constant 0 : index
    %c0_37 = arith.constant 0 : index
    %c0_38 = arith.constant 0 : index
    %103 = vector.load %arg5[%c0_35, %c0_36, %c0_37, %c0_38] : memref<1x1x8x128xf32, #tpu.memory_space<vmem>>, vector<1x1x8x128xf32>
    tpu.vector_store %arg5[%c0_35, %c0_36, %c0_37, %c0_38], %102 {strides = array<i32>} : memref<1x1x8x128xf32, #tpu.memory_space<vmem>>, vector<1x1x8x128xf32>,
    return
  }
  func.func @transform_0(%arg0: i32, %arg1: i32, %arg2: i32) -> (i32, i32, i32, i32) {
    %c1_i32 = arith.constant 1 : i32
    %0 = arith.muli %arg0, %c1_i32 : i32
    %1 = arith.addi %0, %arg2 : i32
    %c1_i32_0 = arith.constant 1 : i32
    %2 = arith.minsi %1, %c1_i32_0 : i32
    %c0_i32 = arith.constant 0 : i32
    %c0_i32_1 = arith.constant 0 : i32
    %c0_i32_2 = arith.constant 0 : i32
    return %arg1, %c0_i32, %c0_i32_1, %2 : i32, i32, i32, i32
  }
  func.func @transform_1(%arg0: i32, %arg1: i32, %arg2: i32) -> (i32, i32) {
    %c1_i32 = arith.constant 1 : i32
    %0 = arith.muli %arg0, %c1_i32 : i32
    %1 = arith.addi %0, %arg2 : i32
    %c1_i32_0 = arith.constant 1 : i32
    %2 = arith.minsi %1, %c1_i32_0 : i32
    %c0_i32 = arith.constant 0 : i32
    %c0_i32_1 = arith.constant 0 : i32
    return %c0_i32, %2 : i32, i32
  }
  func.func @transform_2(%arg0: i32, %arg1: i32, %arg2: i32) -> (i32, i32, i32, i32) {
    %c0_i32 = arith.constant 0 : i32
    %c0_i32_0 = arith.constant 0 : i32
    %c0_i32_1 = arith.constant 0 : i32
    return %arg1, %arg0, %c0_i32, %c0_i32_0 : i32, i32, i32, i32
  }
}

</mosaic_0001>

<bundles_post_ra>
// kernel: ms_tcn_loss.1
= control target key start
LH: loop header
LB: loop body
LE: loop exit
PB: predicated region body
PF: predicated region fallthrough
CT: control target
= control target key end

     0   :  { %s1179_s0 = inlined_call_operand.hbm [shape: f32[3,2,4,256], index: 0, kind: input, shape index: {}]   ;;  %s1180_s1 = inlined_call_operand.hbm [shape: s32[2,256], index: 1, kind: input, shape index: {}]   ;;  %s1181_s2 = inlined_call_operand.vmem [shape: f32[3,2,8,128], index: 2, kind: output, shape index: {}]  }
   0x1   :  { %1188 = sst [smem:[#allocation12_spill]] %s1179_s0 }
   0x2   :  { %7 = vsyncpa [#allocation4], 0 }
   0x3   :  { %9 = vsyncpa [#allocation4 + $0x1], 0 }
   0x4   :  { %10 = vsyncpa [#allocation6], 0 }
   0x5   :  { %12 = vsyncpa [#allocation6 + $0x1], 0  ;;  %s894_s9 = smov 0   ;;  %s896_s10 = smov 0  }
   0x6   :  { %s898_s11 = smov 0   ;;  %s900_s12 = smov 0  }
   0x7   :  { %s902_s13 = smov 0   ;;  %s904_s14 = smov 0  }
   0x8   :  { %s906_s15 = smov 0   ;;  %s908_s16 = smov 0  }
   0x9   :  { %s910_s17 = smov 0   ;;  %s912_s18 = smov 0  }
   0xa   :  { %s914_s19 = smov 0  }
   0xb LB: > { %1189 = sst [smem:[#allocation9_spill]] %s864_s18  ;;  %s33_s20 = sadd.s32 1, %s860_s17  ;;  %s868_s19 = sphi %s914_s19, %s18_s19   ;;  %s864_s18 = sphi %s912_s18, %s1207_s18   ;;  %s860_s17 = sphi %s910_s17, %s1216_s17   ;;  %s856_s16 = sphi %s908_s16, %s1215_s16   ;;  %s852_s15 = sphi %s906_s15, %s1214_s15   ;;  %s848_s14 = sphi %s904_s14, %s1213_s14   ;;  %s844_s13 = sphi %s902_s13, %s1212_s13   ;;  %s840_s12 = sphi %s900_s12, %s1211_s12   ;;  %s836_s11 = sphi %s898_s11, %s1210_s11   ;;  %s832_s10 = sphi %s896_s10, %s1209_s10   ;;  %s828_s9 = sphi %s894_s9, %s1208_s9  }
   0xc   : > { %s37_s21 = sadd.s32 1, %s864_s18  ;;  %p35_p0 = scmp.ge.s32.totalorder %s33_s20, 3 }
   0xd   : > { %p42_p1 = scmp.lt.s32.totalorder %s864_s18, 1  ;;  %p59_p2 = scmp.ne.s32.totalorder %s848_s14, %s844_s13 }
   0xe   : > { %s1218_s20 = smov (%p35_p0, %s33_s20), 0  ;;  %s1220_s21 = smov (!%p35_p0, %s37_s21), %s864_s18 }
   0xf   : > { %1190 = sst [smem:[#allocation10_spill]] %s1218_s20  ;;  %s52_s23 = sadd.s32 1, %s848_s14 }
  0x10   : > { %s960_s22 = scalar_select %p42_p1, %s864_s18, 1 }
  0x11   : > { %p60_p3 = scmp.eq.s32.totalorder %s868_s19, 0  ;;  %p1182_p4 = scmp.lt.s32.totalorder %s868_s19, 6 }
  0x12   : > { %s149_s24 = sand.u32 1, %s848_s14   ;;  %s580_s26 = sshll.u32 %s860_s17, 2 }
  0x13   : > { %p61_p5 = por %p60_p3, %p59_p2  ;;  %s579_s25 = sshll.u32 %s149_s24, 3 }
  0x14   : > { %s161_s27 = sadd.s32 %s580_s26, %s960_s22  ;;  %s153_s28 = scalar_lea.vmem [#allocation3], %s579_s25 }
  0x15   : > { %s164_s29 = sshll.u32 %s153_s28, 4  ;;  %s581_s30 = sshll.u32 %s161_s27, 6  ;;  %s970_s29 = int_to_ptr.vmem [resolvable:$true] %s164_s29 }
  0x16   : > { %s1191_s0 = sld [smem:[#allocation12_spill]]  ;;  %p979_p6 = pnand %p1182_p4, %p61_p5 }
  0x17   : > { %s983_s7 = scalar_lea.sflag [#allocation4], %s149_s24 }
  0x18   : > { %p716_p8 = pneg %p979_p6 }
  0x1c   : > { %s975_s5 = scalar_lea.hbm %s1191_s0, %s581_s30  ;;  %s719_s27 = scalar_lea.hbm %s1191_s0, 768 }
  0x1d   : > { %s714_s8 = scalar_lea.hbm %s975_s5, 128  ;;  %p720_p11 = scmp.lt.u32.totalorder %s975_s5, %s1191_s0 }
  0x1e   : > { %p715_p7 = scmp.ne.s32.totalorder %s975_s5, %s714_s8  ;;  %p721_p12 = scmp.lt.u32.totalorder %s719_s27, %s714_s8 }
  0x1f   : > { %p723_p0 = scmp.lt.u32.totalorder %s714_s8, %s975_s5 }
  0x20   : > { %p717_p9 = pnand %p716_p8, %p715_p7  ;;  %p722_p13 = por %p721_p12, %p720_p11 }
  0x22   : > { %p718_p10 = pneg %p717_p9  ;;  %p724_p1 = por %p723_p0, %p722_p13 }
  0x24   : > { %p725_p2 = pnand %p724_p1, %p718_p10 }
  0x26   : > { %728 = shalt.err (!%p725_p2)
}
  0x27   : > { %s729_s24 = scalar_lea.vmem %s970_s29, 128  ;;  %s870_s3 = smov [#allocation3]  }
  0x28   : > { %p730_p5 = scmp.ne.s32.totalorder %s970_s29, %s729_s24  ;;  %s734_s4 = sshll.u32 %s870_s3, 4  ;;  %s735_s4 = int_to_ptr.vmem [resolvable:$false] %s734_s4 }
  0x29   : > { %s736_s25 = scalar_lea.vmem %s735_s4, 256  ;;  %p737_p4 = scmp.lt.s32.totalorder %s970_s29, %s735_s4 }
  0x2a   : > { %p732_p7 = pnand %p730_p5, %p716_p8  ;;  %p738_p11 = scmp.lt.s32.totalorder %s736_s25, %s729_s24 }
  0x2c   : > { %p733_p9 = pneg %p732_p7  ;;  %p739_p12 = por %p738_p11, %p737_p4 }
  0x2e   : > { %p740_p13 = pnand %p739_p12, %p733_p9 }
  0x30   : > { %743 = shalt.err (!%p740_p13)
}
  0x31   : > { %s871_s8 = smov 128   ;;  %s872_s26 = smov 64  }
  0x32   : > { %s873_s27 = smov 4   ;;  %p584_p4 = scmp.ge.s32.totalorder %s868_s19, 1 }
  0x33   : > { %606 = dma.hbm_to_vmem [thread:$0]  (!%p979_p6), %s975_s5, 128, %s970_s29, %s983_s7, %s871_s8, %s872_s26, %s873_s27  }
  0x34   : > { %p193_p8 = scmp.lt.s32.totalorder %s868_s19, 7  ;;  %s47_s28 = ssub.s32 %s860_s17, %s1218_s20 }
  0x35   : > { %s575_s24 = sadd.s32 4294967295, %s868_s19   ;;  %p39_p0 = scmp.ge.s32.totalorder %s1220_s21, 2 }
  0x36   : > { %p1015_p10 = pnand %p584_p4, %p193_p8  ;;  %p65_p1 = scmp.ne.s32.totalorder %s844_s13, %s840_s12 }
  0x37   : > { %p66_p2 = scmp.eq.s32.totalorder %s575_s24, 0  ;;  %s1222_s21 = smov (%p39_p0, %s1220_s21), 0 }
  0x38   : > { %1194 = sst [smem:[#allocation11_spill]] %s1222_s21  ;;  %p91_p5 = scmp.ne.s32.totalorder %s836_s11, %s832_s10 }
  0x39   : > { %p1026_p6 = por %p66_p2, %p65_p1  ;;  %p45_p7 = scmp.lt.s32.totalorder %s1222_s21, 1 }
  0x3a   : > { %p97_p9 = scmp.ne.s32.totalorder %s832_s10, %s828_s9  ;;  %s84_s5 = sadd.s32 1, %s836_s11 }
  0x3b   : > { %s1195_s29 = scalar_select %p1026_p6, 1, 0 }
  0x3c   : > { %s174_s6 = sand.u32 1, %s836_s11   ;;  %p1040_p11 = por %p91_p5, %p60_p3 }
  0x3d   : > { %s46_s12 = scalar_select %p45_p7, %s1222_s21, 1 }
  0x3e   : > { %p1044_p12 = por %p97_p9, %p66_p2  ;;  %s582_s25 = sshll.u32 %s174_s6, 1 }
  0x3f   : > { %s48_s4 = ssub.s32 %s960_s22, %s46_s12  ;;  %s583_s27 = sshll.u32 %s960_s22, 5 }
  0x40   : > { %s1197_s3 = scalar_select %p1044_p12, 1, 0 }
  0x41   : > { %s49_s8 = sor.u32 %s48_s4, %s47_s28  ;;  %p82_p13 = scmp.eq.s32.totalorder %s48_s4, 0 }
  0x42   : > { %p50_p4 = scmp.eq.s32.totalorder %s49_s8, 0  ;;  %s178_s24 = scalar_lea.vmem [#allocation5], %s582_s25 }
  0x43   : > { %s1050_s9 = scalar_select %p82_p13, %s836_s11, %s84_s5  }
  0x44   : > { %s1055_s26 = scalar_select %p50_p4, %s848_s14, %s52_s23  }
  0x45   : > { %s188_s0 = sshll.u32 %s178_s24, 4  ;;  %s1061_s18 = scalar_lea.hbm %s1180_s1, %s583_s27  ;;  %s1063_s0 = int_to_ptr.vmem [resolvable:$true] %s188_s0 }
  0x46   : > { %p1198_p3 = scmp.lt.s32.totalorder %s868_s19, 6  ;;  %s175_s22 = scalar_lea.sflag [#allocation6], %s174_s6 }
  0x47   : > { %s744_s23 = scalar_lea.hbm %s1061_s18, 32  ;;  %s749_s5 = scalar_lea.hbm %s1180_s1, 64 }
  0x48   : > { %p1069_p8 = pnand %p1198_p3, %p1040_p11  ;;  %p745_p0 = scmp.ne.s32.totalorder %s1061_s18, %s744_s23 }
  0x49   : > { %p750_p7 = scmp.lt.u32.totalorder %s1061_s18, %s1180_s1  ;;  %p751_p9 = scmp.lt.u32.totalorder %s749_s5, %s744_s23 }
  0x4a   : > { %p746_p1 = pneg %p1069_p8  ;;  %p753_p13 = scmp.lt.u32.totalorder %s744_s23, %s1061_s18 }
  0x4b   : > { %p752_p11 = por %p751_p9, %p750_p7 }
  0x4c   : > { %p747_p2 = pnand %p746_p1, %p745_p0 }
  0x4d   : > { %p754_p4 = por %p753_p13, %p752_p11 }
  0x4e   : > { %p748_p5 = pneg %p747_p2 }
  0x50   : > { %p755_p3 = pnand %p754_p4, %p748_p5 }
  0x52   : > { %758 = shalt.err (!%p755_p3)
}
  0x53   : > { %s759_s6 = scalar_lea.vmem %s1063_s0, 32  ;;  %s874_s4 = smov [#allocation5]  }
  0x54   : > { %p760_p0 = scmp.ne.s32.totalorder %s1063_s0, %s759_s6  ;;  %s764_s25 = sshll.u32 %s874_s4, 4  ;;  %s765_s25 = int_to_ptr.vmem [resolvable:$false] %s764_s25 }
  0x55   : > { %s766_s8 = scalar_lea.vmem %s765_s25, 64  ;;  %p767_p6 = scmp.lt.s32.totalorder %s1063_s0, %s765_s25 }
  0x56   : > { %p762_p2 = pnand %p760_p0, %p746_p1  ;;  %p768_p7 = scmp.lt.s32.totalorder %s766_s8, %s759_s6 }
  0x58   : > { %p763_p12 = pneg %p762_p2  ;;  %p769_p9 = por %p768_p7, %p767_p6 }
  0x5a   : > { %p770_p11 = pnand %p769_p9, %p763_p12 }
  0x5c   : > { %773 = shalt.err (!%p770_p11)
}
  0x5d   : > { %609 = dma.hbm_to_vmem [thread:$0]  (!%p1069_p8), %s1061_s18, 32, %s1063_s0, %s175_s22  }
  0x5e   : > { %197 = sbr.rel (%p1015_p10) target bundleno = 501 (0x1f5), region = 28  ;;  %s199_s27 = sand.u32 (!%p1015_p10), 1, %s844_s13  }
  0x5f   : > { %s585_s24 = sshll.u32 (!%p1015_p10), %s199_s27, 3  ;;  %s200_s23 = scalar_lea.sflag (!%p1015_p10), [#allocation4], %s199_s27 }
  0x60   : > { %s203_s20 = scalar_lea.vmem (!%p1015_p10), [#allocation3], %s585_s24  ;;  %p1200_p1 = scmp.ne.s32.totalorder (!%p1015_p10), %s1195_s29, 0 }
  0x65   : > { %819 = dma.done.wait (%p1200_p1), %s200_s23, 128  }
  0x66   : > { %821 = vsyncadd (%p1200_p1), %s200_s23, 4294967168  ;;  %s208_s28 = sand.u32 1, %s832_s10   ;;  %p1201_p10 = scmp.ne.s32.totalorder %s1197_s3, 0 }
  0x67   : > { %s1106_s21 = sshll.u32 %s208_s28, 1  ;;  %s209_s0 = scalar_lea.sflag [#allocation6], %s208_s28 }
  0x68   : > { %s212_s18 = scalar_lea.vmem [#allocation5], %s1106_s21 }
  0x69   : > { %823 = dma.done.wait (%p1201_p10), %s209_s0, 32  }
  0x6a   : > { %825 = vsyncadd (%p1201_p10), %s209_s0, 4294967264  ;;  %vm260_vm0 = vcmask 1043456   ;;  %v256_v0 = vld [vmem:[%s203_s20] sm:$0xf]  ;;  %v257_v1 = vld [vmem:[%s203_s20 + $0x4] sm:$0xf]  ;;  %v301_v20 = vlaneseq }
  0x6b   : > { %v261_v2 = vsel %vm260_vm0, %v256_v0, -inf  ;;  %v268_v3 = vsel %vm260_vm0, %v257_v1, -inf  ;;  %s589_s30 = sshll.u32 %s856_s16, 7  ;;  %v875_v26 = vmov 1966171168   ;;  %s876_s29 = smov 127  }
  0x6c   : > { %v262_v4 = vrot.slane %v261_v2, 4  ;;  %v269_v5 = vrot.slane %v268_v3, 4  ;;  %v1116_v22 = vand.u32 127, %v301_v20  ;;  %v303_v25 = vstv %s589_s30  ;;  %v258_v32 = vld [vmem:[%s212_s18] sm:$0x3]  ;;  %s878_s3 = smov 1  }
  0x6d   : > { %v312_v27 = vunpack.c.l.s4 %v875_v26  ;;  %v310_v33 = vshrl.u32 %v301_v20, 7  ;;  %vm305_vm1 = vcmp.ne.s32.totalorder %v258_v32, 4294967196  ;;  %vm360_vm6 = vcmask 1041408   ;;  %p247_p6 = scmp.lt.s32.totalorder %s852_s15, 2  ;;  %p249_p12 = scmp.lt.s32.totalorder %s856_s16, 1 }
  0x6e   : > { %v263_v6 = vmax.f32 %v261_v2, %v262_v4  ;;  %v270_v7 = vmax.f32 %v268_v3, %v269_v5  ;;  %v304_v30 = vadd.s32 %v303_v25, %v1116_v22  ;;  %v877_v2 = vmov 0.0  }
  0x6f   : > { %v313_v34 = vunpack.c.0.s8 %v312_v27  ;;  %v335_v51 = vsub.s32 0, %v310_v33  ;;  %vm375_vm7 = vcmp.lt.s32.totalorder %v1116_v22, 127  ;;  %s1224_s15 = smov (!%p247_p6, %s852_s15), 2  ;;  %s1226_s16 = smov (!%p249_p12, %s856_s16), 1  ;;  %vm445_vm10 = vcmp.eq.s32.totalorder %v1116_v22, 2 }
  0x70   : > { %v264_v8 = vrot.slane %v263_v6, 2  ;;  %v271_v9 = vrot.slane %v270_v7, 2  ;;  %vm306_vm2 = vcmp.lt.s32.totalorder %v304_v30, 256  ;;  %v376_v5 = vadd.s32 1, %v304_v30  ;;  %s587_s22 = sshll.u32 %s1224_s15, 1 }
  0x71   : > { %vm1123_vm3 = vmand %vm305_vm1, %vm306_vm2  ;;  %v316_v40 = vsub.s32 %v313_v34, %v310_v33  ;;  %s252_s12 = sadd.s32 %s587_s22, %s1226_s16  ;;  %vm444_vm11 = vcmp.eq.s32.totalorder %v1116_v22, 1  ;;  %vm443_vm12 = vcmp.eq.s32.totalorder %v1116_v22, 0 }
  0x72   : > { %v265_v10 = vmax.f32 %v263_v6, %v264_v8  ;;  %v272_v11 = vmax.f32 %v270_v7, %v271_v9  ;;  %v308_v42 = vsel %vm1123_vm3, %v258_v32, 4294967295  ;;  %v590_v3 = vsel %vm1123_vm3, 1.0, %v877_v2  ;;  %s588_s25 = sshll.u32 %s252_s12, 3 }
  0x73   : > { %v317_v46 = vrot.slane %v308_v42, %v316_v40  ;;  %v361_v4 = vsel %vm360_vm6, %v590_v3, 0.0  ;;  %vm377_vm8 = vcmp.lt.s32.totalorder %v376_v5, 256  ;;  %s254_s15 = scalar_lea.vmem %s1181_s2, %s588_s25 }
  0x74   : > { %v266_v12 = vrot.slane %v265_v10, 1  ;;  %v273_v13 = vrot.slane %v272_v11, 1  ;;  %vm378_vm9 = vmand %vm375_vm7, %vm377_vm8 }
  0x75   : > { %v318_v49 = vcombine.high %v317_v46, %v317_v46  ;;  %v325_v50 = vrot.slane %v317_v46, %v316_v40 }
  0x76   : > { %v267_v14 = vmax.f32 %v265_v10, %v266_v12  ;;  %v274_v15 = vmax.f32 %v272_v11, %v273_v13 }
  0x77   : > { %v332_v52 = vrot.slane %v318_v49, %v316_v40  ;;  %v336_v53 = vrot.slane %v325_v50, %v335_v51 }
  0x78   : > { %v275_v16 = vsub.f32 %v256_v0, %v267_v14  ;;  %v276_v17 = vsub.f32 %v257_v1, %v274_v15 }
  0x79   : > { %v340_v54 = vrot.slane %v332_v52, %v335_v51  ;;  %vm341_vm4 = vcmp.eq.s32.totalorder %v310_v33, %v336_v53 }
  0x7a   : > { %v277_v18 = vmul.f32 1.442695, %v275_v16  ;;  %v279_v19 = vmul.f32 1.442695, %v276_v17 }
  0x7b   : > { %vm342_vm5 = vcmp.eq.s32.totalorder %v310_v33, %v340_v54 }
  0x7c   : > { %706 = vpow2.f32 %v277_v18 }
  0x7d   : > { %708 = vpow2.f32 %v279_v19 }
  0x86   : > { %v707_v21 = vpop.eup %706 }
  0x87   : > { %v709_v23 = vpop.eup %708  ;;  %v281_v24 = vsel %vm260_vm0, %v707_v21, 0.0 }
  0x88   : > { %v282_v28 = vrot.slane %v281_v24, 4  ;;  %v288_v29 = vsel %vm260_vm0, %v709_v23, 0.0 }
  0x89   : > { %v289_v31 = vrot.slane %v288_v29, 4 }
  0x8a   : > { %v283_v35 = vadd.f32 %v282_v28, %v281_v24 }
  0x8b   : > { %v290_v36 = vadd.f32 %v289_v31, %v288_v29 }
  0x8c   : > { %v284_v38 = vrot.slane %v283_v35, 2 }
  0x8d   : > { %v291_v39 = vrot.slane %v290_v36, 2 }
  0x8e   : > { %v285_v41 = vadd.f32 %v284_v38, %v283_v35 }
  0x8f   : > { %v292_v43 = vadd.f32 %v291_v39, %v290_v36 }
  0x90   : > { %v286_v44 = vrot.slane %v285_v41, 1 }
  0x91   : > { %v293_v45 = vrot.slane %v292_v43, 1 }
  0x92   : > { %v287_v47 = vadd.f32 %v286_v44, %v285_v41 }
  0x93   : > { %v294_v48 = vadd.f32 %v293_v45, %v292_v43 }
  0x94   : > { %710 = vlog2.f32 %v287_v47 }
  0x95   : > { %712 = vlog2.f32 %v294_v48 }
  0x9e   : > { %v711_v55 = vpop.eup %710 }
  0x9f   : > { %v713_v56 = vpop.eup %712  ;;  %v296_v57 = vmul.f32 0.6931472, %v711_v55 }
  0xa0   : > { %v298_v58 = vmul.f32 0.6931472, %v713_v56 }
  0xa1   : > { %v299_v59 = vsub.f32 %v275_v16, %v296_v57 }
  0xa2   : > { %v300_v60 = vsub.f32 %v276_v17, %v298_v58 }
  0xa3   : > { %371 = vrot.lane.b32.xlu0 %v299_v59, %s876_s29  ;;  %v343_v61 = vsel %vm341_vm4, %v299_v59, 0.0 }
  0xa4   : > { %v344_v62 = vsel %vm342_vm5, %v300_v60, 0.0  ;;  %v345_v63 = vsel %vm260_vm0, %v343_v61, 0.0 }
  0xa5   : > { %v346_v0 = vsel %vm260_vm0, %v344_v62, 0.0 }
  0xa6   : > { %v347_v1 = vadd.f32 %v346_v0, %v345_v63 }
  0xa7   : > { %373 = vrot.lane.b32.xlu0 %v300_v60, %s876_s29 }
  0xa8   : > { %348 = vadd.xlane.f32.xlu1 %v347_v1 }
  0xac   : > { %362 = vadd.xlane.f32.xlu1 %v361_v4 }
  0xbd   : > { %430 = vrot.lane.b32.xlu1 %v299_v59, %s878_s3 }
  0xc1   : > { %432 = vrot.lane.b32.xlu1 %v300_v60, %s878_s3 }
 0x115   : > { %v372_v6 = vpop.permute.xlu0 %371 }
 0x116   : > { %v379_v7 = vsub.f32 %v372_v6, %v299_v59 }
 0x118   : > { %v381_v8 = vmul.f32 %v379_v7, %v379_v7 }
 0x119   : > { %v374_v9 = vpop.permute.xlu0 %373 }
 0x11a   : > { %v383_v10 = vmin.f32 %v381_v8, 16.0  ;;  %v380_v11 = vsub.f32 %v374_v9, %v300_v60 }
 0x11c   : > { %v382_v12 = vmul.f32 %v380_v11, %v380_v11  ;;  %v387_v14 = vsel %vm378_vm9, %v383_v10, 0.0 }
 0x11d   : > { %v389_v16 = vsel %vm260_vm0, %v387_v14, 0.0 }
 0x11e   : > { %v384_v13 = vmin.f32 %v382_v12, 16.0 }
 0x120   : > { %v388_v15 = vsel %vm378_vm9, %v384_v13, 0.0 }
 0x121   : > { %v390_v17 = vsel %vm260_vm0, %v388_v15, 0.0 }
 0x122   : > { %v391_v18 = vadd.f32 %v390_v17, %v389_v16 }
 0x124   : > { %392 = vadd.xlane.f32.xlu0 %v391_v18 }
 0x135   : > { %v349_v19 = vpop.xlane.xlu1 %348 }
 0x136   : > { %v350_v20 = vrot.slane %v349_v19, 4 }
 0x138   : > { %v351_v21 = vadd.f32 %v350_v20, %v349_v19 }
 0x139   : > { %v363_v23 = vpop.xlane.xlu1 %362 }
 0x13a   : > { %v352_v24 = vrot.slane %v351_v21, 2  ;;  %v364_v25 = vrot.slane %v363_v23, 4 }
 0x13c   : > { %v365_v26 = vadd.f32 %v364_v25, %v363_v23  ;;  %v353_v27 = vadd.f32 %v352_v24, %v351_v21 }
 0x13d   : > { %v431_v34 = vpop.permute.xlu1 %430 }
 0x13e   : > { %v366_v28 = vrot.slane %v365_v26, 2  ;;  %v354_v29 = vrot.slane %v353_v27, 1 }
 0x140   : > { %v355_v30 = vadd.f32 %v354_v29, %v353_v27  ;;  %v367_v31 = vadd.f32 %v366_v28, %v365_v26 }
 0x141   : > { %v433_v35 = vpop.permute.xlu1 %432 }
 0x142   : > { %593 = vpush %v355_v30  ;;  %v368_v32 = vrot.slane %v367_v31, 1 }
 0x144   : > { %v369_v33 = vadd.f32 %v368_v32, %v367_v31 }
 0x146   : > { %595 = vpush %v369_v33 }
 0x173   : > { %s594_s5 = spop %593 }
 0x174   : > { %s357_s7 = ssub.f32 0.0, %s594_s5 }
 0x176   : > { %v450_v46 = vstv %s357_s7 }
 0x177   : > { %s596_s6 = spop %595 }
 0x178   : > { %v448_v44 = vstv %s596_s6 }
 0x1b1   : > { %v393_v36 = vpop.xlane.xlu0 %392 }
 0x1b2   : > { %v394_v37 = vrot.slane %v393_v36, 4 }
 0x1b4   : > { %v395_v38 = vadd.f32 %v394_v37, %v393_v36 }
 0x1b6   : > { %v396_v39 = vrot.slane %v395_v38, 2 }
 0x1b8   : > { %v397_v40 = vadd.f32 %v396_v39, %v395_v38 }
 0x1ba   : > { %v398_v41 = vrot.slane %v397_v40, 1 }
 0x1bc   : > { %v399_v42 = vadd.f32 %v398_v41, %v397_v40 }
 0x1be   : > { %597 = vpush %v399_v42 }
 0x1ef   : > { %s598_s4 = spop %597 }
 0x1f0   : > { %v446_v43 = vstv %s598_s4 }
 0x1f1   : > { %v447_v45 = vsel %vm445_vm10, %v446_v43, 0.0 }
 0x1f2   : > { %v449_v47 = vsel %vm444_vm11, %v448_v44, %v447_v45 }
 0x1f3   : > { %v451_v48 = vsel %vm443_vm12, %v450_v46, %v449_v47 }
 0x1f4   : > { %454 = vst [vmem:[%s254_s15] sm:$0xff] %v451_v48 }
 0x1f5 PF: > { %s18_s19 = sadd.s32 1, %s868_s19   ;;  %s1204_s16 = smov %s1050_s9 }
 0x1f6   : > { %p15_p8 = scmp.ge.s32.totalorder %s18_s19, 8   ;;  %s1205_s24 = sld [smem:[#allocation9_spill]] }
 0x1f7   : > { %s1206_s23 = sld [smem:[#allocation10_spill]]  ;;  %s1207_s18 = sld [smem:[#allocation11_spill]] }
 0x1f8   : > { %s1208_s9 = smov %s832_s10  ;;  %s1209_s10 = smov %s836_s11 }
 0x1f9   : > { %s1210_s11 = smov %s1204_s16  ;;  %s1211_s12 = smov %s844_s13 }
 0x1fa   : > { %s1212_s13 = smov %s848_s14  ;;  %s1213_s14 = smov %s1055_s26 }
 0x1fb   : > { %s1214_s15 = smov %s860_s17  ;;  %17 = sbr.rel (!%p15_p8) target bundleno = 11 (0xb), region = 85 }
 0x1fc   : > { %s1215_s16 = smov %s1205_s24 }
 0x1fd   : > { %s1216_s17 = smov %s1206_s23 }
 0x202   :  { %482 = vsyncpa [#allocation4], 1 }
 0x203   :  { %484 = vsyncpa [#allocation4 + $0x1], 1 }
 0x204   :  { %485 = vsyncpa [#allocation6], 1 }
 0x205   :  { %487 = vsyncpa [#allocation6 + $0x1], 1 }

</bundles_post_ra>
